<compile_context>
chip_gen: v7x
topology: tpu7x:2x2x1
jax: 0.10.0
libtpu: 0.0.40
codegen_flags: <defaults>
</compile_context>

<pallas_src>
import functools

import jax
import jax.numpy as jnp
from jax.experimental import pallas as pl
from jax.experimental.pallas import tpu as pltpu

LANE = 128
SUBLANE = 8
# 1024 * 128 * 4 B = 512 KiB per f32 input block.  3 inputs * 2 pipeline
# buffers = 3 MiB of VMEM, comfortably inside the scoped-VMEM defaults on
# v5e (16 MiB), v6e (32 MiB) and v7x (32 MiB scoped / 64 MiB physical), and
# large enough to reach ~85%+ of the HBM roofline for this mem-bound kernel.
MAX_TILE_ROWS = 1024


def _round_up(x, m):
    return ((x + m - 1) // m) * m


def _as_rows(x):
    """Reshape to (rows, LANE) keeping the input dtype.  No big copies in the
    common case where the element count is a multiple of 128."""
    flat = x.reshape(-1)
    n = flat.shape[0]
    if n % LANE != 0:
        # Rare fallback: minimal zero-pad so the slab is lane-dense.  Padded
        # zeros contribute exactly 0 to both L1 sums.
        flat = jnp.pad(flat, (0, _round_up(n, LANE) - n))
    return flat.reshape(-1, LANE)


def _mutual_loss_kernel(f_ref, m_ref, g_ref, out_ref, acc_ref, *,
                        tile_rows, valid_rows, needs_mask):
    i = pl.program_id(0)

    # Zero the vector accumulator on the first grid step.
    @pl.when(i == 0)
    def _():
        acc_ref[...] = jnp.zeros_like(acc_ref)

    f = f_ref[...].astype(jnp.float32)
    m = m_ref[...].astype(jnp.float32)
    g = g_ref[...].astype(jnp.float32)

    # pollute_output - gt == (f - g) * m ; context_output - gt == (f - g)*(1-m)
    d = f - g
    t = d * m
    contrib = jnp.abs(t) + jnp.abs(d - t)

    if needs_mask:
        # Drop rows of the last (partial) block that fall past the array end.
        # jnp.where is a select, so garbage (even NaN) in padded rows is safe.
        row = jax.lax.broadcasted_iota(jnp.int32, (tile_rows, LANE), 0)
        contrib = jnp.where(row + i * tile_rows < valid_rows, contrib, 0.0)

    # Fold the (tile_rows, 128) tile onto the (8, 128) vector accumulator:
    # pure VALU adds over tile-aligned vregs; the cross-lane/sublane reduce
    # is deferred to the epilogue.
    acc_ref[...] += jnp.sum(
        contrib.reshape(tile_rows // SUBLANE, SUBLANE, LANE), axis=0)

    # Emit the global sum on the last grid step.
    @pl.when(i == pl.num_programs(0) - 1)
    def _():
        out_ref[...] = jnp.sum(acc_ref[...], keepdims=True)


@jax.jit
def mutual_loss(feature, softmask, gt):
    n_elems = feature.size

    f2 = _as_rows(feature)
    m2 = _as_rows(softmask)
    g2 = _as_rows(gt)
    rows = f2.shape[0]

    # Tile rows: as big as possible (amortize per-step overhead), always a
    # multiple of the 8-row sublane so the in-kernel fold stays tile-aligned.
    tile_rows = min(MAX_TILE_ROWS, _round_up(rows, SUBLANE))
    num_blocks = pl.cdiv(rows, tile_rows)
    needs_mask = num_blocks * tile_rows > rows

    kernel = functools.partial(
        _mutual_loss_kernel,
        tile_rows=tile_rows,
        valid_rows=rows,
        needs_mask=needs_mask,
    )

    row_spec = pl.BlockSpec((tile_rows, LANE), lambda i: (i, 0))
    out_spec = pl.BlockSpec((1, 1), lambda i: (0, 0))

    total = pl.pallas_call(
        kernel,
        out_shape=jax.ShapeDtypeStruct((1, 1), jnp.float32),
        grid_spec=pltpu.PrefetchScalarGridSpec(
            num_scalar_prefetch=0,
            grid=(num_blocks,),
            in_specs=[row_spec, row_spec, row_spec],
            out_specs=out_spec,
            scratch_shapes=[pltpu.VMEM((SUBLANE, LANE), jnp.float32)],
        ),
        compiler_params=pltpu.CompilerParams(
            dimension_semantics=("arbitrary",),
        ),
    )(f2, m2, g2)

    # total = sum|pollute_out - gt| + sum|context_out - gt|
    # loss  = (mean_p + mean_c) / 2 = total / (2 * n_elems)
    return total[0, 0] / (2.0 * n_elems)


def mutual_loss_ref(feature, softmask, gt):
    f = feature.astype(jnp.float32)
    m = softmask.astype(jnp.float32)
    g = gt.astype(jnp.float32)
    pollute_output = f * m + g * (1.0 - m)
    context_output = f * (1.0 - m) + g * m
    p_loss = jnp.mean(jnp.abs(pollute_output - g))
    c_loss = jnp.mean(jnp.abs(context_output - g))
    return (p_loss + c_loss) / 2.0


if __name__ == "__main__":
    key = jax.random.PRNGKey(0)
    k1, k2, k3 = jax.random.split(key, 3)
    # Small NCHW shapes consistent with the module's usage.
    N, C, H, W = 2, 4, 16, 16
    feature = jax.random.normal(k1, (N, C, H, W), dtype=jnp.float32)
    gt = jax.random.normal(k2, (N, C, H, W), dtype=jnp.float32)
    softmask = jax.random.uniform(k3, (N, C, H, W), dtype=jnp.float32)

    loss = mutual_loss(feature, softmask, gt)
    loss = jax.block_until_ready(loss)

    ref = mutual_loss_ref(feature, softmask, gt)
    assert jnp.allclose(loss, ref, rtol=1e-5, atol=1e-6), (loss, ref)
    print("KERNEL_OK")
</pallas_src>

<mosaic_0001>
module attributes {stable_mosaic.version = 11 : i64} {
  func.func @_mutual_loss_kernel(%arg0: i32, %arg1: memref<16x128xf32, #tpu.memory_space<vmem>>, %arg2: memref<16x128xf32, #tpu.memory_space<vmem>>, %arg3: memref<16x128xf32, #tpu.memory_space<vmem>>, %arg4: memref<1x1xf32, #tpu.memory_space<vmem>>, %arg5: memref<8x128xf32, #tpu.memory_space<vmem>>) attributes {dimension_semantics = [#tpu.dimension_semantics<arbitrary>], iteration_bounds = array<i64: 1>, scalar_prefetch = 0 : i64, scratch_operands = 1 : i64, tpu.core_type = #tpu.core_type<tc>, window_params = [{transform_indices = @transform_0, window_bounds = array<i64: 16, 128>}, {transform_indices = @transform_1, window_bounds = array<i64: 16, 128>}, {transform_indices = @transform_2, window_bounds = array<i64: 16, 128>}, {pipeline_mode = #tpu.pipeline_mode<synchronous>, transform_indices = @transform_3, window_bounds = array<i64: 1, 1>}]} {
    %c0_i32 = arith.constant 0 : i32
    %0 = arith.cmpi eq, %arg0, %c0_i32 : i32
    %1 = arith.extui %0 : i1 to i32
    %c0_i32_0 = arith.constant 0 : i32
    %2 = arith.cmpi ne, %1, %c0_i32_0 : i32
    scf.if %2 {
      %cst_12 = arith.constant 0.000000e+00 : f32
      %20 = vector.broadcast %cst_12 : f32 to vector<8x128xf32>
      %c0_13 = arith.constant 0 : index
      %c0_14 = arith.constant 0 : index
      %21 = vector.load %arg5[%c0_13, %c0_14] : memref<8x128xf32, #tpu.memory_space<vmem>>, vector<8x128xf32>
      tpu.vector_store %arg5[%c0_13, %c0_14], %20 {strides = array<i32>} : memref<8x128xf32, #tpu.memory_space<vmem>>, vector<8x128xf32>,
    } else {
    }
    %c0 = arith.constant 0 : index
    %c0_1 = arith.constant 0 : index
    %3 = vector.load %arg1[%c0, %c0_1] : memref<16x128xf32, #tpu.memory_space<vmem>>, vector<16x128xf32>
    %c0_2 = arith.constant 0 : index
    %c0_3 = arith.constant 0 : index
    %4 = vector.load %arg2[%c0_2, %c0_3] : memref<16x128xf32, #tpu.memory_space<vmem>>, vector<16x128xf32>
    %c0_4 = arith.constant 0 : index
    %c0_5 = arith.constant 0 : index
    %5 = vector.load %arg3[%c0_4, %c0_5] : memref<16x128xf32, #tpu.memory_space<vmem>>, vector<16x128xf32>
    %6 = arith.subf %3, %5 : vector<16x128xf32>
    %7 = arith.mulf %6, %4 : vector<16x128xf32>
    %8 = math.absf %7 : vector<16x128xf32>
    %9 = arith.subf %6, %7 : vector<16x128xf32>
    %10 = math.absf %9 : vector<16x128xf32>
    %11 = arith.addf %8, %10 : vector<16x128xf32>
    %c0_6 = arith.constant 0 : index
    %c0_7 = arith.constant 0 : index
    %12 = vector.load %arg5[%c0_6, %c0_7] : memref<8x128xf32, #tpu.memory_space<vmem>>, vector<8x128xf32>
    %13 = vector.shape_cast %11 : vector<16x128xf32> to vector<2x8x128xf32>
    %cst = arith.constant dense<0.000000e+00> : vector<8x128xf32>
    %14 = vector.multi_reduction <add>, %13, %cst [0] : vector<2x8x128xf32> to vector<8x128xf32>
    %15 = arith.addf %12, %14 : vector<8x128xf32>
    %c0_8 = arith.constant 0 : index
    %c0_9 = arith.constant 0 : index
    %16 = vector.load %arg5[%c0_8, %c0_9] : memref<8x128xf32, #tpu.memory_space<vmem>>, vector<8x128xf32>
    tpu.vector_store %arg5[%c0_8, %c0_9], %15 {strides = array<i32>} : memref<8x128xf32, #tpu.memory_space<vmem>>, vector<8x128xf32>,
    %c0_i32_10 = arith.constant 0 : i32
    %17 = arith.cmpi eq, %arg0, %c0_i32_10 : i32
    %18 = arith.extui %17 : i1 to i32
    %c0_i32_11 = arith.constant 0 : i32
    %19 = arith.cmpi ne, %18, %c0_i32_11 : i32
    scf.if %19 {
      %c0_12 = arith.constant 0 : index
      %c0_13 = arith.constant 0 : index
      %20 = vector.load %arg5[%c0_12, %c0_13] : memref<8x128xf32, #tpu.memory_space<vmem>>, vector<8x128xf32>
      %21 = vector.shape_cast %20 : vector<8x128xf32> to vector<1x8x128xf32>
      %cst_14 = arith.constant dense<0.000000e+00> : vector<1xf32>
      %22 = vector.multi_reduction <add>, %21, %cst_14 [1, 2] : vector<1x8x128xf32> to vector<1xf32>
      %23 = vector.shape_cast %22 : vector<1xf32> to vector<1x1x1xf32>
      %24 = vector.extract %23[0, 0, 0] : f32 from vector<1x1x1xf32>
      %25 = vector.broadcast %24 : f32 to vector<1x1xf32>
      %c0_15 = arith.constant 0 : index
      %c0_16 = arith.constant 0 : index
      %26 = vector.load %arg4[%c0_15, %c0_16] : memref<1x1xf32, #tpu.memory_space<vmem>>, vector<1x1xf32>
      tpu.vector_store %arg4[%c0_15, %c0_16], %25 {strides = array<i32>} : memref<1x1xf32, #tpu.memory_space<vmem>>, vector<1x1xf32>,
    } else {
    }
    return
  }
  func.func @transform_0(%arg0: i32) -> (i32, i32) {
    %c0_i32 = arith.constant 0 : i32
    %c0_i32_0 = arith.constant 0 : i32
    return %arg0, %c0_i32 : i32, i32
  }
  func.func @transform_1(%arg0: i32) -> (i32, i32) {
    %c0_i32 = arith.constant 0 : i32
    %c0_i32_0 = arith.constant 0 : i32
    return %arg0, %c0_i32 : i32, i32
  }
  func.func @transform_2(%arg0: i32) -> (i32, i32) {
    %c0_i32 = arith.constant 0 : i32
    %c0_i32_0 = arith.constant 0 : i32
    return %arg0, %c0_i32 : i32, i32
  }
  func.func @transform_3(%arg0: i32) -> (i32, i32) {
    %c0_i32 = arith.constant 0 : i32
    %c0_i32_0 = arith.constant 0 : i32
    %c0_i32_1 = arith.constant 0 : i32
    return %c0_i32, %c0_i32_0 : i32, i32
  }
}

</mosaic_0001>

<bundles_post_ra>
// kernel: mutual_loss.1
= control target key start
LH: loop header
LB: loop body
LE: loop exit
PB: predicated region body
PF: predicated region fallthrough
CT: control target
= control target key end

     0   :  { %s150_s0 = inlined_call_operand.vmem [shape: f32[16,128], index: 0, kind: input, shape index: {}]   ;;  %s151_s1 = inlined_call_operand.vmem [shape: f32[16,128], index: 1, kind: input, shape index: {}]   ;;  %s152_s2 = inlined_call_operand.vmem [shape: f32[16,128], index: 2, kind: input, shape index: {}]   ;;  %s153_s3 = inlined_call_operand.hbm [shape: f32[1,1], index: 3, kind: output, shape index: {}]  }
   0x1   :  { %v20_v0 = vld [vmem:[%s150_s0] sm:$0xff]  ;;  %v21_v1 = vld [vmem:[%s150_s0 + $0x8] sm:$0xff] }
   0x2   :  { %v22_v2 = vld [vmem:[%s151_s1] sm:$0xff]  ;;  %v23_v3 = vld [vmem:[%s151_s1 + $0x8] sm:$0xff] }
   0x3   :  { %v24_v4 = vld [vmem:[%s152_s2] sm:$0xff]  ;;  %v25_v5 = vld [vmem:[%s152_s2 + $0x8] sm:$0xff] }
   0x4   :  { %v26_v6 = vsub.f32 %v20_v0, %v24_v4  ;;  %v27_v7 = vsub.f32 %v21_v1, %v25_v5 }
   0x5   :  { %8 = vsyncpa [#allocation4], 0  ;;  %s99_s0 = smov [#allocation3]   ;;  %vm56_vm0 = vcmask 0  }
   0x6   :  { %v28_v8 = vmul.f32 %v26_v6, %v22_v2  ;;  %v29_v9 = vmul.f32 %v27_v7, %v23_v3  ;;  %s64_s1 = sshll.u32 %s99_s0, 4  ;;  %s65_s1 = int_to_ptr.vmem [resolvable:$true] %s64_s1 }
   0x7   :  { %s75_s24 = scalar_lea.vmem %s65_s1, 16  ;;  %s79_s25 = scalar_lea.vmem %s65_s1, 32 }
   0x8   :  { %v30_v10 = vand.u32 2147483647, %v28_v8  ;;  %v31_v11 = vand.u32 2147483647, %v29_v9  ;;  %v32_v12 = vsub.f32 %v26_v6, %v28_v8  ;;  %v33_v13 = vsub.f32 %v27_v7, %v29_v9  ;;  %p76_p0 = scmp.ne.s32.totalorder %s65_s1, %s75_s24  ;;  %p80_p1 = scmp.lt.s32.totalorder %s65_s1, %s65_s1 }
   0x9   :  { %p81_p2 = scmp.lt.s32.totalorder %s79_s25, %s75_s24 }
   0xa   :  { %v34_v14 = vand.u32 2147483647, %v32_v12  ;;  %v35_v15 = vand.u32 2147483647, %v33_v13 }
   0xb   :  { %p82_p3 = por %p81_p2, %p80_p1 }
   0xc   :  { %v36_v16 = vadd.f32 %v34_v14, %v30_v10  ;;  %v37_v17 = vadd.f32 %v35_v15, %v31_v11 }
   0xd   :  { %p83_p4 = pnand %p82_p3, %p76_p0 }
   0xe   :  { %v39_v18 = vadd.f32 %v37_v17, %v36_v16 }
  0x10   :  { %46 = vadd.xlane.f32.xlu0 %v39_v18 }
  0x9d   :  { %v47_v19 = vpop.xlane.xlu0 %46 }
  0x9e   :  { %v48_v20 = vrot.slane %v47_v19, 4 }
  0xa0   :  { %v49_v21 = vadd.f32 %v48_v20, %v47_v19 }
  0xa2   :  { %v50_v22 = vrot.slane %v49_v21, 2 }
  0xa4   :  { %v51_v23 = vadd.f32 %v50_v22, %v49_v21 }
  0xa6   :  { %v52_v24 = vrot.slane %v51_v23, 1 }
  0xa8   :  { %v53_v25 = vadd.f32 %v52_v24, %v51_v23 }
  0xaa   :  { %72 = vpush %v53_v25 }
  0xdb   :  { %s73_s2 = spop %72 }
  0xdc   :  { %v55_v26 = vstv %s73_s2 }
  0xdd   :  { %57 = vst.msk [vmem:[#allocation3] sm:$0x1] %vm56_vm0, %v55_v26 }
  0xde   :  { %86 = shalt.err (!%p83_p4)
}
  0xdf   :  { %s87_s28 = scalar_lea.hbm %s153_s3, 16 }
  0xe0   :  { %p88_p5 = scmp.ne.s32.totalorder %s153_s3, %s87_s28  ;;  %p91_p6 = scmp.lt.u32.totalorder %s87_s28, %s153_s3 }
  0xe2   :  { %p93_p7 = pnand %p91_p6, %p88_p5 }
  0xe4   :  { %96 = shalt.err (!%p93_p7)
}
  0xe5   :  { %67 = dma.vmem_to_hbm [thread:$0]  %s65_s1, 16, %s153_s3, [#allocation4]  }
  0xe6   :  { %97 = dma.done.wait [#allocation4], 16  }
  0xe7   :  { %98 = vsyncadd [#allocation4], 4294967280 }
  0xe8   :  { %71 = vsyncpa [#allocation4], 1 }

</bundles_post_ra>
